<compile_context>
chip_gen: v7x
topology: tpu7x:2x2x1
jax: 0.10.0
libtpu: 0.0.40
codegen_flags: <defaults>
</compile_context>

<pallas_src>
import jax
import jax.numpy as jnp
from jax import lax
from jax.experimental import pallas as pl
from jax.experimental.pallas import tpu as pltpu


def _mlp_kernel(p_ref, w1_ref, b1_ref, w2_ref, b2_ref, o_ref):
    # p_ref : (KKC_pad, L_blk)  bf16 im2col patches (batch folded into lanes)
    # w1_ref: (C1, KKC_pad)     bf16 first-conv weights (reduction rows match p)
    # b1_ref: (C1, 1)           f32
    # w2_ref: (Cout, C1)        bf16 1x1-conv weights
    # b2_ref: (Cout, 1)         f32
    # o_ref : (Cout, L_blk)     f32 lane-dense output slab
    h = lax.dot_general(
        w1_ref[...], p_ref[...],
        dimension_numbers=(((1,), (0,)), ((), ())),
        preferred_element_type=jnp.float32)               # (C1, L_blk) f32 acc
    h = jnp.maximum(h + b1_ref[...], 0.0)                 # ReLU(conv1 + b1)

    z = lax.dot_general(
        w2_ref[...], h.astype(jnp.bfloat16),
        dimension_numbers=(((1,), (0,)), ((), ())),
        preferred_element_type=jnp.float32) + b2_ref[...]  # (Cout, L_blk)

    # sigmoid(z) == 0.5 * (tanh(z/2) + 1): routes transcendental to the EUP.
    o_ref[...] = (0.5 * (jnp.tanh(0.5 * z) + 1.0)).astype(o_ref.dtype)


def _tensorcores_per_chip():
    """v7x has 2 TensorCores/chip; v5e/v6e have 1. Default to 1 if unknown."""
    try:
        kind = jax.devices()[0].device_kind.lower()
    except Exception:
        return 1
    return 2 if ("v7" in kind or "7x" in kind) else 1


def mlp_forward(x_nchw, w1_oihw, b1, w2_oihw, b2, batch_block=None):
    """MLP forward. x_nchw: (N, 3, H, W) float32, returns (N, 3, H, W) float32."""
    N, Cin, H, W = x_nchw.shape
    C1 = w1_oihw.shape[0]
    Cout = w2_oihw.shape[0]
    K = w1_oihw.shape[2]
    P = K // 2
    HW = H * W
    KKC = Cin * K * K
    KKC_pad = ((KKC + 15) // 16) * 16        # 75 -> 80 (bf16 sublane granule)

    # --- batch blocking: 1 step on single-TC chips, >=2 parallel steps on v7x ---
    if batch_block is None:
        n_tc = _tensorcores_per_chip()
        batch_block = N if n_tc == 1 else max(1, N // n_tc)
    if N % batch_block != 0:
        batch_block = 1
    L_blk = batch_block * HW                 # lanes per grid step (multiple of 128)
    num_steps = N // batch_block

    # --- glue (plain JAX) ---
    # Transpose the SMALL un-expanded padded input to channels-first, then
    # im2col directly into (Cin*K*K, N*H*W): no HBM pass over the 25x tensor.
    x_pad = jnp.pad(x_nchw, ((0, 0), (0, 0), (P, P), (P, P)))     # (N,Cin,H+4,W+4)
    x_cf = jnp.transpose(x_pad, (1, 0, 2, 3))                     # tiny transpose
    taps = [x_cf[:, :, kh:kh + H, kw:kw + W]
            for kh in range(K) for kw in range(K)]                # each (Cin,N,H,W)
    patches = jnp.stack(taps, axis=1)                             # (Cin,KK,N,H,W)
    patches = patches.reshape(KKC, N * HW)                        # free reshape
    patches = jnp.pad(patches, ((0, KKC_pad - KKC), (0, 0)))      # pad K dim
    patches = patches.astype(jnp.bfloat16)

    w1_mat = jnp.pad(w1_oihw.reshape(C1, KKC),
                     ((0, 0), (0, KKC_pad - KKC))).astype(jnp.bfloat16)
    w2_mat = w2_oihw[:, :, 0, 0].astype(jnp.bfloat16)             # (Cout, C1)
    b1_col = b1.reshape(C1, 1).astype(jnp.float32)
    b2_col = b2.reshape(Cout, 1).astype(jnp.float32)

    cost = pl.CostEstimate(
        flops=2 * N * HW * (KKC_pad * C1 + C1 * Cout),
        transcendentals=N * Cout * HW,
        bytes_accessed=(2 * (KKC_pad * N * HW + C1 * KKC_pad + Cout * C1)
                        + 4 * (C1 + Cout + Cout * N * HW)))

    out = pl.pallas_call(
        _mlp_kernel,
        out_shape=jax.ShapeDtypeStruct((Cout, N * HW), jnp.float32),
        grid_spec=pltpu.PrefetchScalarGridSpec(
            num_scalar_prefetch=0,
            grid=(num_steps,),
            in_specs=[
                pl.BlockSpec((KKC_pad, L_blk), lambda i: (0, i)),  # lane chunk
                pl.BlockSpec((C1, KKC_pad), lambda i: (0, 0)),
                pl.BlockSpec((C1, 1), lambda i: (0, 0)),
                pl.BlockSpec((Cout, C1), lambda i: (0, 0)),
                pl.BlockSpec((Cout, 1), lambda i: (0, 0)),
            ],
            out_specs=pl.BlockSpec((Cout, L_blk), lambda i: (0, i)),
        ),
        compiler_params=pltpu.CompilerParams(
            dimension_semantics=("parallel",)),
        cost_estimate=cost,
    )(patches, w1_mat, b1_col, w2_mat, b2_col)

    # Output is (Cout, N*HW); the transpose back to NCHW is 6 KB — negligible.
    return jnp.transpose(out.reshape(Cout, N, H, W), (1, 0, 2, 3))


def _reference_forward(x_nchw, w1_oihw, b1, w2_oihw, b2):
    """Pure-JAX f32 reference (lax.conv) for a correctness check."""
    y = lax.conv_general_dilated(
        x_nchw, w1_oihw, window_strides=(1, 1), padding=((2, 2), (2, 2)),
        dimension_numbers=("NCHW", "OIHW", "NCHW"))
    y = jax.nn.relu(y + b1.reshape(1, -1, 1, 1))
    z = lax.conv_general_dilated(
        y, w2_oihw, window_strides=(1, 1), padding=((0, 0), (0, 0)),
        dimension_numbers=("NCHW", "OIHW", "NCHW"))
    z = z + b2.reshape(1, -1, 1, 1)
    return jax.nn.sigmoid(z)


if __name__ == "__main__":
    # Small shapes consistent with the module: batch=2, Cin=3, H=W=16, n_units1=32.
    N, Cin, H, W = 2, 3, 16, 16
    n_units1 = 32
    Cout = 3
    K = 5

    key = jax.random.PRNGKey(0)
    kx, kw1, kb1, kw2, kb2 = jax.random.split(key, 5)

    x = jax.random.normal(kx, (N, Cin, H, W), dtype=jnp.float32)

    # Deterministic parameter init (PyTorch-style uniform bounds from fan_in).
    fan_in1 = Cin * K * K
    bound1 = 1.0 / (fan_in1 ** 0.5)
    w1 = jax.random.uniform(kw1, (n_units1, Cin, K, K), jnp.float32, -bound1, bound1)
    b1 = jax.random.uniform(kb1, (n_units1,), jnp.float32, -bound1, bound1)

    fan_in2 = n_units1
    bound2 = 1.0 / (fan_in2 ** 0.5)
    w2 = jax.random.uniform(kw2, (Cout, n_units1, 1, 1), jnp.float32, -bound2, bound2)
    b2 = jax.random.uniform(kb2, (Cout,), jnp.float32, -bound2, bound2)

    out = jax.block_until_ready(mlp_forward(x, w1, b1, w2, b2))

    ref = jax.block_until_ready(_reference_forward(x, w1, b1, w2, b2))
    assert out.shape == (N, Cout, H, W)
    # bf16 GEMM operands (f32 accumulation) vs f32 reference: relaxed tolerance.
    assert jnp.allclose(out, ref, rtol=1e-2, atol=1e-2), "mismatch vs reference"

    print("KERNEL_OK")
</pallas_src>

<mosaic_0001>
module attributes {stable_mosaic.version = 11 : i64} {
  func.func @_mlp_kernel(%arg0: i32, %arg1: memref<80x512xbf16, #tpu.memory_space<vmem>>, %arg2: memref<32x80xbf16, #tpu.memory_space<vmem>>, %arg3: memref<32x1xf32, #tpu.memory_space<vmem>>, %arg4: memref<3x32xbf16, #tpu.memory_space<vmem>>, %arg5: memref<3x1xf32, #tpu.memory_space<vmem>>, %arg6: memref<3x512xf32, #tpu.memory_space<vmem>>) attributes {dimension_semantics = [#tpu.dimension_semantics<parallel>], iteration_bounds = array<i64: 1>, scalar_prefetch = 0 : i64, scratch_operands = 0 : i64, tpu.core_type = #tpu.core_type<tc>, window_params = [{transform_indices = @transform_0, window_bounds = array<i64: 80, 512>}, {pipeline_mode = #tpu.pipeline_mode<synchronous>, transform_indices = @transform_1, window_bounds = array<i64: 32, 80>}, {pipeline_mode = #tpu.pipeline_mode<synchronous>, transform_indices = @transform_2, window_bounds = array<i64: 32, 1>}, {pipeline_mode = #tpu.pipeline_mode<synchronous>, transform_indices = @transform_3, window_bounds = array<i64: 3, 32>}, {pipeline_mode = #tpu.pipeline_mode<synchronous>, transform_indices = @transform_4, window_bounds = array<i64: 3, 1>}, {transform_indices = @transform_5, window_bounds = array<i64: 3, 512>}]} {
    %c0 = arith.constant 0 : index
    %c0_0 = arith.constant 0 : index
    %0 = vector.load %arg2[%c0, %c0_0] : memref<32x80xbf16, #tpu.memory_space<vmem>>, vector<32x80xbf16>
    %c0_1 = arith.constant 0 : index
    %c0_2 = arith.constant 0 : index
    %1 = vector.load %arg1[%c0_1, %c0_2] : memref<80x512xbf16, #tpu.memory_space<vmem>>, vector<80x512xbf16>
    %cst = arith.constant dense<0.000000e+00> : vector<32x512xf32>
    %2 = tpu.matmul %0, %1, %cst {dimension_numbers = #tpu.dot_dimension_numbers<[1], [0], [0], [1], [0, 0, 1, 1], [], []>} : vector<32x80xbf16>, vector<80x512xbf16>, vector<32x512xf32> -> vector<32x512xf32>
    %c0_3 = arith.constant 0 : index
    %c0_4 = arith.constant 0 : index
    %3 = vector.load %arg3[%c0_3, %c0_4] : memref<32x1xf32, #tpu.memory_space<vmem>>, vector<32x1xf32>
    %4 = vector.broadcast %3 : vector<32x1xf32> to vector<32x512xf32>
    %5 = arith.addf %2, %4 : vector<32x512xf32>
    %cst_5 = arith.constant 0.000000e+00 : f32
    %6 = vector.broadcast %cst_5 : f32 to vector<32x512xf32>
    %7 = arith.maximumf %5, %6 : vector<32x512xf32>
    %c0_6 = arith.constant 0 : index
    %c0_7 = arith.constant 0 : index
    %8 = vector.load %arg4[%c0_6, %c0_7] : memref<3x32xbf16, #tpu.memory_space<vmem>>, vector<3x32xbf16>
    %9 = arith.truncf %7 : vector<32x512xf32> to vector<32x512xbf16>
    %cst_8 = arith.constant dense<0.000000e+00> : vector<3x512xf32>
    %10 = tpu.matmul %8, %9, %cst_8 {dimension_numbers = #tpu.dot_dimension_numbers<[1], [0], [0], [1], [0, 0, 1, 1], [], []>} : vector<3x32xbf16>, vector<32x512xbf16>, vector<3x512xf32> -> vector<3x512xf32>
    %c0_9 = arith.constant 0 : index
    %c0_10 = arith.constant 0 : index
    %11 = vector.load %arg5[%c0_9, %c0_10] : memref<3x1xf32, #tpu.memory_space<vmem>>, vector<3x1xf32>
    %12 = vector.broadcast %11 : vector<3x1xf32> to vector<3x512xf32>
    %13 = arith.addf %10, %12 : vector<3x512xf32>
    %cst_11 = arith.constant 5.000000e-01 : f32
    %14 = vector.broadcast %cst_11 : f32 to vector<3x512xf32>
    %15 = arith.mulf %14, %13 : vector<3x512xf32>
    %16 = math.tanh %15 : vector<3x512xf32>
    %cst_12 = arith.constant 1.000000e+00 : f32
    %17 = vector.broadcast %cst_12 : f32 to vector<3x512xf32>
    %18 = arith.addf %16, %17 : vector<3x512xf32>
    %cst_13 = arith.constant 5.000000e-01 : f32
    %19 = vector.broadcast %cst_13 : f32 to vector<3x512xf32>
    %20 = arith.mulf %19, %18 : vector<3x512xf32>
    %c0_14 = arith.constant 0 : index
    %c0_15 = arith.constant 0 : index
    %21 = vector.load %arg6[%c0_14, %c0_15] : memref<3x512xf32, #tpu.memory_space<vmem>>, vector<3x512xf32>
    tpu.vector_store %arg6[%c0_14, %c0_15], %20 {strides = array<i32>} : memref<3x512xf32, #tpu.memory_space<vmem>>, vector<3x512xf32>,
    return
  }
  func.func @transform_0(%arg0: i32) -> (i32, i32) {
    %c0_i32 = arith.constant 0 : i32
    %c0_i32_0 = arith.constant 0 : i32
    return %c0_i32, %arg0 : i32, i32
  }
  func.func @transform_1(%arg0: i32) -> (i32, i32) {
    %c0_i32 = arith.constant 0 : i32
    %c0_i32_0 = arith.constant 0 : i32
    %c0_i32_1 = arith.constant 0 : i32
    return %c0_i32, %c0_i32_0 : i32, i32
  }
  func.func @transform_2(%arg0: i32) -> (i32, i32) {
    %c0_i32 = arith.constant 0 : i32
    %c0_i32_0 = arith.constant 0 : i32
    %c0_i32_1 = arith.constant 0 : i32
    return %c0_i32, %c0_i32_0 : i32, i32
  }
  func.func @transform_3(%arg0: i32) -> (i32, i32) {
    %c0_i32 = arith.constant 0 : i32
    %c0_i32_0 = arith.constant 0 : i32
    %c0_i32_1 = arith.constant 0 : i32
    return %c0_i32, %c0_i32_0 : i32, i32
  }
  func.func @transform_4(%arg0: i32) -> (i32, i32) {
    %c0_i32 = arith.constant 0 : i32
    %c0_i32_0 = arith.constant 0 : i32
    %c0_i32_1 = arith.constant 0 : i32
    return %c0_i32, %c0_i32_0 : i32, i32
  }
  func.func @transform_5(%arg0: i32) -> (i32, i32) {
    %c0_i32 = arith.constant 0 : i32
    %c0_i32_0 = arith.constant 0 : i32
    return %c0_i32, %arg0 : i32, i32
  }
}

</mosaic_0001>

<bundles_post_ra>
// kernel: tpu_custom_call.1
= control target key start
LH: loop header
LB: loop body
LE: loop exit
PB: predicated region body
PF: predicated region fallthrough
CT: control target
= control target key end

     0   :  { %10 = vsyncpa [#allocation3], 0  ;;  %s679_s0 = inlined_call_operand.hbm [shape: bf16[80,512], index: 0, kind: input, shape index: {}]   ;;  %s680_s1 = inlined_call_operand.vmem [shape: bf16[32,80], index: 1, kind: input, shape index: {}]   ;;  %s681_s2 = inlined_call_operand.vmem [shape: f32[32,1], index: 2, kind: input, shape index: {}]   ;;  %s682_s3 = inlined_call_operand.vmem [shape: bf16[3,32], index: 3, kind: input, shape index: {}]   ;;  %s683_s4 = inlined_call_operand.vmem [shape: f32[3,1], index: 4, kind: input, shape index: {}]   ;;  %s684_s5 = inlined_call_operand.hbm [shape: f32[3,512], index: 5, kind: output, shape index: {}]  }
   0x1   :  { %11 = vsyncpa [#allocation4], 0  ;;  %s588_s18 = smov [#allocation2]   ;;  %s540_s22 = scalar_lea.hbm %s679_s0, 2560 }
   0x2   :  { %s17_s19 = sshll.u32 %s588_s18, 4  ;;  %p541_p0 = scmp.ne.s32.totalorder %s679_s0, %s540_s22  ;;  %s18_s19 = int_to_ptr.vmem [resolvable:$true] %s17_s19 }
   0x3   :  { %p544_p1 = scmp.lt.u32.totalorder %s540_s22, %s679_s0 }
   0x5   :  { %p546_p2 = pnand %p544_p1, %p541_p0 }
   0x7   :  { %549 = shalt.err (!%p546_p2)
}
   0x8   :  { %s550_s27 = scalar_lea.vmem %s18_s19, 2560  ;;  %p555_p4 = scmp.lt.s32.totalorder %s18_s19, %s18_s19 }
   0x9   :  { %p551_p3 = scmp.ne.s32.totalorder %s18_s19, %s550_s27  ;;  %p556_p5 = scmp.lt.s32.totalorder %s550_s27, %s550_s27 }
   0xb   :  { %p557_p6 = por %p556_p5, %p555_p4 }
   0xd   :  { %p558_p7 = pnand %p557_p6, %p551_p3 }
   0xf   :  { %561 = shalt.err (!%p558_p7)
}
  0x10   :  { %s589_s28 = smov 256   ;;  %s590_s29 = smov 16  }
  0x11   :  { %23 = dma.hbm_to_vmem [thread:$0]  %s679_s0, 2560, %s18_s19, [#allocation3], %s589_s28, %s589_s28, %s590_s29  }
  0x12   :  { %584 = dma.done.wait [#allocation3], 2560  }
  0x13   :  { %585 = vsyncadd [#allocation3], 4294964736  ;;  %v591_v0 = vmov 0   ;;  %v500_v1 = vld [vmem:[#allocation2 + $0x4] ss:$16 sps:$4 sm:$0xff]   ;;  %v61_v24 = vld [vmem:[%s681_s2 + $0x8] sm:$0xff] }
  0x14   :  { %233 = vmatprep.mubr.bf16.mxu0 %v591_v0  ;;  %286 = vmatprep.mubr.bf16.mxu1 %v591_v0  ;;  %v502_v2 = vld [vmem:[#allocation2 + $0xc] ss:$16 sps:$4 sm:$0xff]   ;;  %v504_v3 = vld [vmem:[#allocation2] ss:$16 sps:$4 sm:$0xff]   ;;  %v505_v4 = vld [vmem:[#allocation2 + $0x8] ss:$16 sps:$4 sm:$0xff]  }
  0x15   :  { %498 = vset.pattern.permute.xlu0 %v591_v0  ;;  %499 = vset.pattern.permute.xlu1 %v591_v0  ;;  %v506_v5 = vld [vmem:[#allocation2 + $0x24] ss:$16 sps:$4 sm:$0xff]   ;;  %v508_v6 = vld [vmem:[#allocation2 + $0x2c] ss:$16 sps:$4 sm:$0xff]   ;;  %v510_v7 = vld [vmem:[#allocation2 + $0x20] ss:$16 sps:$4 sm:$0xff]  }
  0x16   :  { %201 = vmatprep.subr.bf16.mxu0 %v500_v1  ;;  %254 = vmatprep.subr.bf16.mxu1 %v502_v2  ;;  %v511_v8 = vld [vmem:[#allocation2 + $0x28] ss:$16 sps:$4 sm:$0xff]   ;;  %v512_v9 = vld [vmem:[#allocation2 + $0x44] ss:$16 sps:$4 sm:$0xff]   ;;  %v514_v10 = vld [vmem:[#allocation2 + $0x4c] ss:$16 sps:$4 sm:$0xff]  }
  0x17   :  { %202 = vmatpush1.bf16.msra.mxu0 %v504_v3  ;;  %255 = vmatpush1.bf16.msra.mxu1 %v505_v4  ;;  %v516_v11 = vld [vmem:[#allocation2 + $0x40] ss:$16 sps:$4 sm:$0xff]   ;;  %v517_v12 = vld [vmem:[#allocation2 + $0x48] ss:$16 sps:$4 sm:$0xff]   ;;  %v518_v13 = vld [vmem:[#allocation2 + $0x64] ss:$16 sps:$4 sm:$0xff]  }
  0x18   :  { %203 = vmatprep.subr.bf16.mxu0 %v506_v5  ;;  %256 = vmatprep.subr.bf16.mxu1 %v508_v6  ;;  %v520_v14 = vld [vmem:[#allocation2 + $0x6c] ss:$16 sps:$4 sm:$0xff]   ;;  %v522_v15 = vld [vmem:[#allocation2 + $0x60] ss:$16 sps:$4 sm:$0xff]   ;;  %v523_v16 = vld [vmem:[#allocation2 + $0x68] ss:$16 sps:$4 sm:$0xff]  }
  0x19   :  { %v524_v17 = vld [vmem:[#allocation2 + $0x84] ss:$16 sps:$4 sm:$0xff]   ;;  %v526_v18 = vld [vmem:[#allocation2 + $0x8c] ss:$16 sps:$4 sm:$0xff]   ;;  %v528_v20 = vld [vmem:[#allocation2 + $0x80] ss:$16 sps:$4 sm:$0xff]  }
  0x1a   :  { %v60_v19 = vld [vmem:[%s681_s2] sm:$0xff]  ;;  %v529_v21 = vld [vmem:[#allocation2 + $0x88] ss:$16 sps:$4 sm:$0xff]   ;;  %v62_v22 = vld [vmem:[%s681_s2 + $0x10] sm:$0xff]  ;;  %vm194_vm0 = vcmask 654336   ;;  %vm338_vm1 = vcmask 261120  }
  0x1b   :  { %204 = vmatpush1.bf16.msra.mxu0 %v510_v7  ;;  %257 = vmatpush1.bf16.msra.mxu1 %v511_v8  ;;  %v530_v23 = vld [vmem:[%s680_s1] sm:$0xff]   ;;  %v63_v25 = vld [vmem:[%s681_s2 + $0x18] sm:$0xff]  ;;  %v531_v27 = vld [vmem:[%s680_s1 + $0x8] sm:$0xff]  }
  0x1c   :  { %205 = vmatprep.subr.bf16.mxu0 %v512_v9  ;;  %258 = vmatprep.subr.bf16.mxu1 %v514_v10  ;;  %v332_v26 = vld [vmem:[%s683_s4] sm:$0x7] }
  0x1d   :  { %66 = vperm.xlu0 %498, %v60_v19   ;;  %76 = vperm.xlu1 %499, %v62_v22  }
  0x1f   :  { %206 = vmatpush1.bf16.msra.mxu0 %v516_v11  ;;  %259 = vmatpush1.bf16.msra.mxu1 %v517_v12 }
  0x20   :  { %207 = vmatprep.subr.bf16.mxu0 %v518_v13  ;;  %260 = vmatprep.subr.bf16.mxu1 %v520_v14 }
  0x21   :  { %71 = vperm.xlu0 %498, %v61_v24   ;;  %81 = vperm.xlu1 %499, %v63_v25   ;;  %v323_v24 = vld [vmem:[%s682_s3] sm:$0x3]  ;;  %s592_s3 = smov [#allocation5]  }
  0x22   :  { %s456_s4 = sshll.u32 %s592_s3, 4  ;;  %s457_s4 = int_to_ptr.vmem [resolvable:$true] %s456_s4 }
  0x23   :  { %208 = vmatpush1.bf16.msra.mxu0 %v522_v15  ;;  %261 = vmatpush1.bf16.msra.mxu1 %v523_v16  ;;  %s562_s20 = scalar_lea.vmem %s457_s4, 256  ;;  %p567_p9 = scmp.lt.s32.totalorder %s457_s4, %s457_s4 }
  0x24   :  { %209 = vmatprep.subr.bf16.mxu0 %v524_v17  ;;  %262 = vmatprep.subr.bf16.mxu1 %v526_v18  ;;  %p563_p8 = scmp.ne.s32.totalorder %s457_s4, %s562_s20  ;;  %p568_p10 = scmp.lt.s32.totalorder %s562_s20, %s562_s20 }
  0x25   :  { %335 = vperm.xlu0 %498, %v332_v26  }
  0x26   :  { %p569_p11 = por %p568_p10, %p567_p9 }
  0x27   :  { %210 = vmatpush1.bf16.msra.mxu0 %v528_v20  ;;  %263 = vmatpush1.bf16.msra.mxu1 %v529_v21 }
  0x28   :  { %p570_p12 = pnand %p569_p11, %p563_p8 }
  0x2a   :  { %487 = vmatmul.mubr.msk.bf16.vlgmr.msra.gmra.mrb[0].mxu0 %vm194_vm0, %v530_v23  ;;  %489 = vmatmul.mubr.msk.bf16.vlgmr.msra.gmra.mrb[0].mxu1 %vm194_vm0, %v530_v23 }
  0x2b   :  { %243 = vmatprep.mubr.bf16.mxu0 %v591_v0  ;;  %296 = vmatprep.mubr.bf16.mxu1 %v591_v0 }
  0x32   :  { %488 = vmatmul.mubr.msk.bf16.gmra.mrb[4].mxu0 %vm194_vm0, %v531_v27  ;;  %490 = vmatmul.mubr.msk.bf16.gmra.mrb[4].mxu1 %vm194_vm0, %v531_v27 }
  0x33   :  { %374 = vmatprep.mubr.bf16.mxu0 %v591_v0  ;;  %415 = vmatprep.mubr.bf16.mxu1 %v591_v0 }
  0x9c   :  { %v67_v28 = vpop.permute.xlu0 %66  ;;  %v77_v30 = vpop.permute.xlu1 %76 }
  0xa0   :  { %v72_v29 = vpop.permute.xlu0 %71  ;;  %v82_v57 = vpop.permute.xlu1 %81 }
  0xa4   :  { %v336_v25 = vpop.permute.xlu0 %335 }
  0xfd   :  { %v235_v31 = vpop.f32.mrb[0].mxu0  ;;  %v288_v32 = vpop.f32.mrb[0].mxu1 }
  0xfe   :  { %v236_v33 = vadd.f32 %v235_v31, %v67_v28  ;;  %v289_v34 = vadd.f32 %v288_v32, %v67_v28  ;;  %v237_v35 = vpop.f32.mrb[1].mxu0  ;;  %v290_v36 = vpop.f32.mrb[1].mxu1 }
  0xff   :  { %v238_v37 = vadd.f32 %v237_v35, %v67_v28  ;;  %v291_v38 = vadd.f32 %v290_v36, %v67_v28  ;;  %v239_v39 = vpop.f32.mrb[2].mxu0  ;;  %v292_v40 = vpop.f32.mrb[2].mxu1 }
 0x100   :  { %v240_v41 = vadd.f32 %v239_v39, %v72_v29  ;;  %v293_v42 = vadd.f32 %v292_v40, %v72_v29  ;;  %v241_v43 = vpop.f32.mrb[3].mxu0  ;;  %v294_v44 = vpop.f32.mrb[3].mxu1  ;;  %v307_v47 = vmax.f32 %v236_v33, 0.0  ;;  %v309_v48 = vmax.f32 %v289_v34, 0.0 }
 0x101   :  { %v242_v45 = vadd.f32 %v241_v43, %v72_v29  ;;  %v295_v46 = vadd.f32 %v294_v44, %v72_v29  ;;  %v308_v51 = vmax.f32 %v238_v37, 0.0  ;;  %v310_v52 = vmax.f32 %v291_v38, 0.0 }
 0x102   :  { %v311_v49 = vmax.f32 %v240_v41, 0.0  ;;  %v313_v50 = vmax.f32 %v293_v42, 0.0 }
 0x103   :  { %v312_v53 = vmax.f32 %v242_v45, 0.0  ;;  %v314_v54 = vmax.f32 %v295_v46, 0.0 }
 0x104   :  { %v324_v55 = vpack.c.bf16 %v311_v49, %v307_v47  ;;  %v326_v56 = vpack.c.bf16 %v313_v50, %v309_v48 }
 0x105   :  { %v325_v58 = vpack.c.bf16 %v312_v53, %v308_v51  ;;  %v327_v59 = vpack.c.bf16 %v314_v54, %v310_v52  ;;  %v245_v60 = vpop.f32.mrb[4].mxu0  ;;  %v298_v61 = vpop.f32.mrb[4].mxu1 }
 0x106   :  { %v246_v62 = vadd.f32 %v245_v60, %v77_v30  ;;  %v299_v63 = vadd.f32 %v298_v61, %v77_v30  ;;  %v247_v0 = vpop.f32.mrb[5].mxu0  ;;  %v300_v1 = vpop.f32.mrb[5].mxu1 }
 0x107   :  { %v248_v2 = vadd.f32 %v247_v0, %v77_v30  ;;  %v301_v3 = vadd.f32 %v300_v1, %v77_v30  ;;  %v249_v4 = vpop.f32.mrb[6].mxu0  ;;  %v302_v5 = vpop.f32.mrb[6].mxu1  ;;  %342 = vmatprep.subr.bf16.mxu0 %v325_v58  ;;  %383 = vmatprep.subr.bf16.mxu1 %v327_v59 }
 0x108   :  { %v250_v6 = vadd.f32 %v249_v4, %v82_v57  ;;  %v303_v7 = vadd.f32 %v302_v5, %v82_v57  ;;  %v251_v8 = vpop.f32.mrb[7].mxu0  ;;  %v304_v9 = vpop.f32.mrb[7].mxu1  ;;  %343 = vmatpush1.bf16.msra.mxu0 %v324_v55  ;;  %384 = vmatpush1.bf16.msra.mxu1 %v326_v56  ;;  %v315_v12 = vmax.f32 %v246_v62, 0.0  ;;  %v317_v13 = vmax.f32 %v299_v63, 0.0 }
 0x109   :  { %v252_v10 = vadd.f32 %v251_v8, %v82_v57  ;;  %v305_v11 = vadd.f32 %v304_v9, %v82_v57  ;;  %v316_v16 = vmax.f32 %v248_v2, 0.0  ;;  %v318_v17 = vmax.f32 %v301_v3, 0.0 }
 0x10a   :  { %v319_v14 = vmax.f32 %v250_v6, 0.0  ;;  %v321_v15 = vmax.f32 %v303_v7, 0.0 }
 0x10b   :  { %v320_v18 = vmax.f32 %v252_v10, 0.0  ;;  %v322_v19 = vmax.f32 %v305_v11, 0.0 }
 0x10c   :  { %v328_v20 = vpack.c.bf16 %v319_v14, %v315_v12  ;;  %v330_v21 = vpack.c.bf16 %v321_v15, %v317_v13 }
 0x10d   :  { %v329_v22 = vpack.c.bf16 %v320_v18, %v316_v16  ;;  %v331_v23 = vpack.c.bf16 %v322_v19, %v318_v17 }
 0x10f   :  { %344 = vmatprep.subr.bf16.mxu0 %v329_v22  ;;  %385 = vmatprep.subr.bf16.mxu1 %v331_v23 }
 0x110   :  { %345 = vmatpush1.bf16.msra.mxu0 %v328_v20  ;;  %386 = vmatpush1.bf16.msra.mxu1 %v330_v21 }
 0x113   :  { %491 = vmatmul.mubr.msk.bf16.vlgmr.msra.gmra.mrb[8].mxu0 %vm338_vm1, %v323_v24  ;;  %492 = vmatmul.mubr.msk.bf16.vlgmr.msra.gmra.mrb[8].mxu1 %vm338_vm1, %v323_v24 }
 0x1e6   :  { %v376_v26 = vpop.f32.mrb[8].mxu0  ;;  %v417_v27 = vpop.f32.mrb[8].mxu1 }
 0x1e7   :  { %v377_v28 = vadd.f32 %v376_v26, %v336_v25  ;;  %v418_v29 = vadd.f32 %v417_v27, %v336_v25  ;;  %v378_v30 = vpop.f32.mrb[9].mxu0  ;;  %v419_v31 = vpop.f32.mrb[9].mxu1 }
 0x1e8   :  { %v379_v32 = vadd.f32 %v378_v30, %v336_v25  ;;  %v420_v33 = vadd.f32 %v419_v31, %v336_v25  ;;  %v380_v34 = vpop.f32.mrb[10].mxu0  ;;  %v421_v35 = vpop.f32.mrb[10].mxu1 }
 0x1e9   :  { %v424_v36 = vmul.f32 0.5, %v377_v28  ;;  %v426_v37 = vmul.f32 0.5, %v418_v29  ;;  %v381_v38 = vpop.f32.mrb[11].mxu0  ;;  %v422_v39 = vpop.f32.mrb[11].mxu1 }
 0x1ea   :  { %v425_v40 = vmul.f32 0.5, %v379_v32  ;;  %v427_v41 = vmul.f32 0.5, %v420_v33 }
 0x1eb   :  { %532 = vtanh.f32 %v424_v36 }
 0x1ec   :  { %534 = vtanh.f32 %v426_v37 }
 0x1ed   :  { %536 = vtanh.f32 %v425_v40 }
 0x1ee   :  { %538 = vtanh.f32 %v427_v41 }
 0x1f5   :  { %v533_v42 = vpop.eup %532 }
 0x1f6   :  { %v535_v43 = vpop.eup %534  ;;  %v432_v44 = vadd.f32 1.0, %v533_v42 }
 0x1f7   :  { %v537_v45 = vpop.eup %536  ;;  %v434_v46 = vadd.f32 1.0, %v535_v43 }
 0x1f8   :  { %v539_v47 = vpop.eup %538  ;;  %v436_v48 = vmul.f32 0.5, %v432_v44  ;;  %v433_v49 = vadd.f32 1.0, %v537_v45 }
 0x1f9   :  { %v438_v50 = vmul.f32 0.5, %v434_v46  ;;  %v435_v51 = vadd.f32 1.0, %v539_v47 }
 0x1fa   :  { %v437_v52 = vmul.f32 0.5, %v433_v49 }
 0x1fb   :  { %v439_v53 = vmul.f32 0.5, %v435_v51 }
 0x1fc   :  { %v444_v54 = vcombine.low %v436_v48, %v437_v52 }
 0x1fd   :  { %v445_v55 = vcombine.low %v438_v50, %v439_v53 }
 0x1fe   :  { %448 = vst [vmem:[#allocation5] sm:$0x77] %v444_v54 }
 0x1ff   :  { %449 = vst [vmem:[#allocation5 + $0x8] sm:$0x77] %v445_v55 }
 0x200   :  { %573 = shalt.err (!%p570_p12)
}
 0x201   :  { %s574_s23 = scalar_lea.hbm %s684_s5, 256 }
 0x202   :  { %p575_p13 = scmp.ne.s32.totalorder %s684_s5, %s574_s23  ;;  %p578_p0 = scmp.lt.u32.totalorder %s574_s23, %s684_s5 }
 0x204   :  { %p580_p1 = pnand %p578_p0, %p575_p13 }
 0x206   :  { %583 = shalt.err (!%p580_p1)
}
 0x207   :  { %459 = dma.vmem_to_hbm [thread:$0]  %s457_s4, 256, %s684_s5, [#allocation4]  }
 0x208   :  { %586 = dma.done.wait [#allocation4], 256  }
 0x209   :  { %587 = vsyncadd [#allocation4], 4294967040 }
 0x20a   :  { %463 = vsyncpa [#allocation3], 1 }
 0x20b   :  { %464 = vsyncpa [#allocation4], 1 }

</bundles_post_ra>
